<compile_context>
chip_gen: v6e
topology: v6e:2x2x1
jax: 0.10.0
libtpu: 0.0.40
codegen_flags: <defaults>
</compile_context>

<pallas_src>
import functools

import jax
import jax.numpy as jnp
import numpy as np
from jax.experimental import pallas as pl
from jax.experimental.pallas import tpu as pltpu

_LANE = 128
_BN_EPS = 1e-5


def _round_up(x: int, m: int) -> int:
    return (x + m - 1) // m * m


def _projection_head(x_ref, w1_ref, bn_ref, w2_ref, out_ref, bn_eps):
    """One Projection head: Linear -> BN(train) -> ReLU -> Linear -> L2 norm.

    x_ref:   (B, din)          f32  (unpadded, full-extent block)
    w1_ref:  (din, dh_pad)     f32  (lane-padded with zeros)
    bn_ref:  (8, dh_pad)       f32  row 0 = b1, row 1 = gamma, row 2 = beta
    w2_ref:  (dh_pad, dout_pad) f32
    out_ref: (B, dout_pad)     f32  (lane-dense; padded lanes written as 0)
    """
    # Linear 1 (with bias) -- MXU, f32 accumulation.
    h = jnp.dot(x_ref[...], w1_ref[...],
                preferred_element_type=jnp.float32) + bn_ref[0:1, :]

    # BatchNorm1d, training mode (batch mean, biased variance), folded into a
    # per-feature scale/shift.  Centered two-pass variance avoids the
    # E[h^2]-E[h]^2 cancellation flagged in review.
    mean = jnp.mean(h, axis=0, keepdims=True)
    centered = h - mean
    var = jnp.mean(centered * centered, axis=0, keepdims=True)
    inv_std = jax.lax.rsqrt(var + bn_eps)            # EUP slot
    a = bn_ref[1:2, :] * inv_std                     # gamma * inv_std
    b = bn_ref[2:3, :] - mean * a                    # beta - mean * a

    # scale/shift + ReLU.  Padded lanes stay exactly zero (gamma/beta pad = 0).
    h_act = jnp.maximum(h * a + b, 0.0)

    # Linear 2 (no bias) -- MXU, f32 accumulation.
    z = jnp.dot(h_act, w2_ref[...], preferred_element_type=jnp.float32)

    # F.normalize(dim=1): z / max(||z||, 1e-12) == z * rsqrt(max(||z||^2, 1e-24)).
    sq_norm = jnp.sum(z * z, axis=1, keepdims=True)
    out_ref[...] = z * jax.lax.rsqrt(jnp.maximum(sq_norm, 1e-24))


def _clip_dual_projection_kernel(x_img_ref, w1_img_ref, bn_img_ref, w2_img_ref,
                                 x_txt_ref, w1_txt_ref, bn_txt_ref, w2_txt_ref,
                                 out_img_ref, out_txt_ref, *, bn_eps):
    _projection_head(x_img_ref, w1_img_ref, bn_img_ref, w2_img_ref,
                     out_img_ref, bn_eps)
    _projection_head(x_txt_ref, w1_txt_ref, bn_txt_ref, w2_txt_ref,
                     out_txt_ref, bn_eps)


def clip_projection_forward(x_img, x_txt, p_img, p_txt, bn_eps=_BN_EPS):
    """Runs BOTH projection heads in one grid-less pallas_call (VMEM-resident)."""
    B = x_img.shape[0]
    dout_pad = p_img["w2"].shape[-1]
    assert p_txt["w2"].shape[-1] == dout_pad

    kernel = functools.partial(_clip_dual_projection_kernel, bn_eps=bn_eps)

    # Advisory cost estimate so XLA can schedule/overlap this small custom call.
    flops = 0
    transcendentals = 0
    bytes_accessed = 0
    for x, p in ((x_img, p_img), (x_txt, p_txt)):
        din, dh_pad = p["w1"].shape
        flops += 2 * B * (din * dh_pad + dh_pad * dout_pad)
        transcendentals += dh_pad + B
        bytes_accessed += sum(int(t.size) * t.dtype.itemsize
                              for t in (x, p["w1"], p["bn"], p["w2"]))
        bytes_accessed += B * dout_pad * 4
    cost = pl.CostEstimate(flops=int(flops),
                           transcendentals=int(transcendentals),
                           bytes_accessed=int(bytes_accessed))

    vmem_spec = pl.BlockSpec(memory_space=pltpu.MemorySpace.VMEM)  # whole array

    # TODO(synk): at realistic CLIP sizes switch to M/K grid tiling with
    # vmem_limit_bytes set, CORE_PARALLEL modality axis on v7x, and int8/fp8
    # weight storage; BN stats must then come from a full-batch reduction pass.
    return pl.pallas_call(
        kernel,
        out_shape=(jax.ShapeDtypeStruct((B, dout_pad), jnp.float32),
                   jax.ShapeDtypeStruct((B, dout_pad), jnp.float32)),
        in_specs=[vmem_spec] * 8,
        out_specs=(vmem_spec, vmem_spec),
        cost_estimate=cost,
    )(x_img, p_img["w1"], p_img["bn"], p_img["w2"],
      x_txt, p_txt["w1"], p_txt["bn"], p_txt["w2"])


@functools.partial(jax.jit, static_argnames=("output_dim",))
def _clip_forward(x_img, x_txt, p_img, p_txt, *, output_dim):
    out_img, out_txt = clip_projection_forward(x_img, x_txt, p_img, p_txt)
    # Static slice lives inside the same jit as the kernel (no extra dispatch).
    return out_img[:, :output_dim], out_txt[:, :output_dim]


def init_projection_params(key, input_dim, hidden_dim, output_dim,
                           dh_pad, dout_pad):
    """PyTorch-Linear-like uniform init; hidden/output dims zero-padded to 128.

    Weights are stored pre-transposed as (in, out) so the kernel does x @ W.
    b1 / gamma / beta are merged into a single (8, dh_pad) tile so they travel
    in ONE aligned (8,128) DMA (rows 0..2 used, rows 3..7 zero).
    """
    k1, k2, k3 = jax.random.split(key, 3)
    lim1 = 1.0 / float(input_dim) ** 0.5
    lim2 = 1.0 / float(hidden_dim) ** 0.5
    w1 = jax.random.uniform(k1, (input_dim, hidden_dim), jnp.float32, -lim1, lim1)
    b1 = jax.random.uniform(k2, (hidden_dim,), jnp.float32, -lim1, lim1)
    w2 = jax.random.uniform(k3, (hidden_dim, output_dim), jnp.float32, -lim2, lim2)
    gamma = jnp.ones((hidden_dim,), jnp.float32)    # BatchNorm1d weight
    beta = jnp.zeros((hidden_dim,), jnp.float32)    # BatchNorm1d bias

    bn = jnp.zeros((8, dh_pad), jnp.float32)
    bn = bn.at[0, :hidden_dim].set(b1)
    bn = bn.at[1, :hidden_dim].set(gamma)           # zero-padded lanes stay inert
    bn = bn.at[2, :hidden_dim].set(beta)

    w1_p = jnp.pad(w1, ((0, 0), (0, dh_pad - hidden_dim)))
    w2_p = jnp.pad(w2, ((0, dh_pad - hidden_dim), (0, dout_pad - output_dim)))
    return {"w1": w1_p, "bn": bn, "w2": w2_p}


class CLIPModelPallas:
    """JAX/Pallas equivalent of the PyTorch CLIPModel forward pass."""

    def __init__(self, config, key):
        self.config = config
        self.output_dim = config["projection_output_dim"]
        self.temperature = config["temperature"]   # only used by the (host-side) loss

        dout_pad = _round_up(self.output_dim, _LANE)
        ki, kt = jax.random.split(key)
        self.params_img = init_projection_params(
            ki, config["image_input_dim"], config["image_hidden_dim"],
            self.output_dim, _round_up(config["image_hidden_dim"], _LANE), dout_pad)
        self.params_txt = init_projection_params(
            kt, config["text_input_dim"], config["text_hidden_dim"],
            self.output_dim, _round_up(config["text_hidden_dim"], _LANE), dout_pad)

    def __call__(self, batch):
        image_feats, text_feats = batch
        return _clip_forward(image_feats, text_feats,
                             self.params_img, self.params_txt,
                             output_dim=self.output_dim)


def _reference_projection_np(x, w1, b1, gamma, beta, w2, eps=_BN_EPS):
    """Float64 numpy reference mirroring the PyTorch module (training-mode BN)."""
    x, w1, b1 = (np.asarray(a, np.float64) for a in (x, w1, b1))
    gamma, beta, w2 = (np.asarray(a, np.float64) for a in (gamma, beta, w2))
    h = x @ w1 + b1
    mean = h.mean(axis=0)
    var = ((h - mean) ** 2).mean(axis=0)            # biased variance (train mode)
    h = (h - mean) / np.sqrt(var + eps) * gamma + beta
    h = np.maximum(h, 0.0)
    z = h @ w2
    norm = np.maximum(np.linalg.norm(z, axis=1, keepdims=True), 1e-12)
    return z / norm


if __name__ == "__main__":
    config = {
        "image_input_dim": 32,
        "image_hidden_dim": 64,
        "text_input_dim": 48,
        "text_hidden_dim": 64,
        "projection_output_dim": 16,
        "temperature": 1.0,
    }
    batch_size = 16   # multiple of 16 -> sublane-friendly tiles (review item)

    key = jax.random.PRNGKey(0)
    k_params, k_img, k_txt = jax.random.split(key, 3)

    model = CLIPModelPallas(config, k_params)

    image_feats = jax.random.normal(
        k_img, (batch_size, config["image_input_dim"]), jnp.float32)
    text_feats = jax.random.normal(
        k_txt, (batch_size, config["text_input_dim"]), jnp.float32)

    img_emb, txt_emb = model((image_feats, text_feats))
    jax.block_until_ready((img_emb, txt_emb))

    # Sanity check against an independent float64 numpy reference of the
    # PyTorch math.  Tolerance accommodates possible bf16-pass rounding of the
    # TPU f32 MXU matmuls at these tiny contraction sizes.
    d_out = config["projection_output_dim"]

    def _unpack(p, hid):
        return (p["w1"][:, :hid], p["bn"][0, :hid], p["bn"][1, :hid],
                p["bn"][2, :hid], p["w2"][:hid, :d_out])

    img_ref = _reference_projection_np(
        image_feats, *_unpack(model.params_img, config["image_hidden_dim"]))
    txt_ref = _reference_projection_np(
        text_feats, *_unpack(model.params_txt, config["text_hidden_dim"]))

    assert img_emb.shape == (batch_size, d_out)
    assert txt_emb.shape == (batch_size, d_out)
    assert np.allclose(np.asarray(img_emb, np.float64), img_ref, atol=5e-3)
    assert np.allclose(np.asarray(txt_emb, np.float64), txt_ref, atol=5e-3)

    print("KERNEL_OK")
</pallas_src>

<mosaic_0001>
module attributes {stable_mosaic.version = 11 : i64} {
  func.func @_clip_dual_projection_kernel(%arg0: memref<16x32xf32, #tpu.memory_space<vmem>>, %arg1: memref<32x128xf32, #tpu.memory_space<vmem>>, %arg2: memref<8x128xf32, #tpu.memory_space<vmem>>, %arg3: memref<128x128xf32, #tpu.memory_space<vmem>>, %arg4: memref<16x48xf32, #tpu.memory_space<vmem>>, %arg5: memref<48x128xf32, #tpu.memory_space<vmem>>, %arg6: memref<8x128xf32, #tpu.memory_space<vmem>>, %arg7: memref<128x128xf32, #tpu.memory_space<vmem>>, %arg8: memref<16x128xf32, #tpu.memory_space<vmem>>, %arg9: memref<16x128xf32, #tpu.memory_space<vmem>>) attributes {dimension_semantics = [], scalar_prefetch = 0 : i64, scratch_operands = 0 : i64, tpu.core_type = #tpu.core_type<tc>} {
    %c0 = arith.constant 0 : index
    %c0_0 = arith.constant 0 : index
    %0 = vector.load %arg0[%c0, %c0_0] : memref<16x32xf32, #tpu.memory_space<vmem>>, vector<16x32xf32>
    %c0_1 = arith.constant 0 : index
    %c0_2 = arith.constant 0 : index
    %1 = vector.load %arg1[%c0_1, %c0_2] : memref<32x128xf32, #tpu.memory_space<vmem>>, vector<32x128xf32>
    %cst = arith.constant dense<0.000000e+00> : vector<16x128xf32>
    %2 = tpu.matmul %0, %1, %cst {dimension_numbers = #tpu.dot_dimension_numbers<[1], [0], [0], [1], [0, 0, 1, 1], [], []>} : vector<16x32xf32>, vector<32x128xf32>, vector<16x128xf32> -> vector<16x128xf32>
    %c0_3 = arith.constant 0 : index
    %c0_4 = arith.constant 0 : index
    %3 = vector.load %arg2[%c0_3, %c0_4] : memref<8x128xf32, #tpu.memory_space<vmem>>, vector<1x128xf32>
    %4 = vector.broadcast %3 : vector<1x128xf32> to vector<16x128xf32>
    %5 = arith.addf %2, %4 : vector<16x128xf32>
    %cst_5 = arith.constant dense<0.000000e+00> : vector<128xf32>
    %6 = vector.multi_reduction <add>, %5, %cst_5 [0] : vector<16x128xf32> to vector<128xf32>
    %7 = vector.shape_cast %6 : vector<128xf32> to vector<1x128xf32>
    %cst_6 = arith.constant 1.600000e+01 : f32
    %8 = vector.broadcast %cst_6 : f32 to vector<1x128xf32>
    %9 = arith.divf %7, %8 : vector<1x128xf32>
    %10 = vector.broadcast %9 : vector<1x128xf32> to vector<16x128xf32>
    %11 = arith.subf %5, %10 : vector<16x128xf32>
    %12 = arith.mulf %11, %11 : vector<16x128xf32>
    %cst_7 = arith.constant dense<0.000000e+00> : vector<128xf32>
    %13 = vector.multi_reduction <add>, %12, %cst_7 [0] : vector<16x128xf32> to vector<128xf32>
    %14 = vector.shape_cast %13 : vector<128xf32> to vector<1x128xf32>
    %cst_8 = arith.constant 1.600000e+01 : f32
    %15 = vector.broadcast %cst_8 : f32 to vector<1x128xf32>
    %16 = arith.divf %14, %15 : vector<1x128xf32>
    %cst_9 = arith.constant 9.99999974E-6 : f32
    %17 = vector.broadcast %cst_9 : f32 to vector<1x128xf32>
    %18 = arith.addf %16, %17 : vector<1x128xf32>
    %19 = math.rsqrt %18 : vector<1x128xf32>
    %c1 = arith.constant 1 : index
    %c0_10 = arith.constant 0 : index
    %20 = vector.load %arg2[%c1, %c0_10] : memref<8x128xf32, #tpu.memory_space<vmem>>, vector<1x128xf32>
    %21 = arith.mulf %20, %19 : vector<1x128xf32>
    %c2 = arith.constant 2 : index
    %c0_11 = arith.constant 0 : index
    %22 = vector.load %arg2[%c2, %c0_11] : memref<8x128xf32, #tpu.memory_space<vmem>>, vector<1x128xf32>
    %23 = arith.mulf %9, %21 : vector<1x128xf32>
    %24 = arith.subf %22, %23 : vector<1x128xf32>
    %25 = vector.broadcast %21 : vector<1x128xf32> to vector<16x128xf32>
    %26 = arith.mulf %5, %25 : vector<16x128xf32>
    %27 = vector.broadcast %24 : vector<1x128xf32> to vector<16x128xf32>
    %28 = arith.addf %26, %27 : vector<16x128xf32>
    %cst_12 = arith.constant 0.000000e+00 : f32
    %29 = vector.broadcast %cst_12 : f32 to vector<16x128xf32>
    %30 = arith.maximumf %28, %29 : vector<16x128xf32>
    %c0_13 = arith.constant 0 : index
    %c0_14 = arith.constant 0 : index
    %31 = vector.load %arg3[%c0_13, %c0_14] : memref<128x128xf32, #tpu.memory_space<vmem>>, vector<128x128xf32>
    %cst_15 = arith.constant dense<0.000000e+00> : vector<16x128xf32>
    %32 = tpu.matmul %30, %31, %cst_15 {dimension_numbers = #tpu.dot_dimension_numbers<[1], [0], [0], [1], [0, 0, 1, 1], [], []>} : vector<16x128xf32>, vector<128x128xf32>, vector<16x128xf32> -> vector<16x128xf32>
    %33 = arith.mulf %32, %32 : vector<16x128xf32>
    %cst_16 = arith.constant dense<0.000000e+00> : vector<16xf32>
    %34 = vector.multi_reduction <add>, %33, %cst_16 [1] : vector<16x128xf32> to vector<16xf32>
    %35 = vector.shape_cast %34 : vector<16xf32> to vector<16x1xf32>
    %cst_17 = arith.constant 1.000000e-24 : f32
    %36 = vector.broadcast %cst_17 : f32 to vector<16x1xf32>
    %37 = arith.maximumf %35, %36 : vector<16x1xf32>
    %38 = math.rsqrt %37 : vector<16x1xf32>
    %39 = vector.broadcast %38 : vector<16x1xf32> to vector<16x128xf32>
    %40 = arith.mulf %32, %39 : vector<16x128xf32>
    %c0_18 = arith.constant 0 : index
    %c0_19 = arith.constant 0 : index
    %41 = vector.load %arg8[%c0_18, %c0_19] : memref<16x128xf32, #tpu.memory_space<vmem>>, vector<16x128xf32>
    tpu.vector_store %arg8[%c0_18, %c0_19], %40 {strides = array<i32>} : memref<16x128xf32, #tpu.memory_space<vmem>>, vector<16x128xf32>,
    %c0_20 = arith.constant 0 : index
    %c0_21 = arith.constant 0 : index
    %42 = vector.load %arg4[%c0_20, %c0_21] : memref<16x48xf32, #tpu.memory_space<vmem>>, vector<16x48xf32>
    %c0_22 = arith.constant 0 : index
    %c0_23 = arith.constant 0 : index
    %43 = vector.load %arg5[%c0_22, %c0_23] : memref<48x128xf32, #tpu.memory_space<vmem>>, vector<48x128xf32>
    %cst_24 = arith.constant dense<0.000000e+00> : vector<16x128xf32>
    %44 = tpu.matmul %42, %43, %cst_24 {dimension_numbers = #tpu.dot_dimension_numbers<[1], [0], [0], [1], [0, 0, 1, 1], [], []>} : vector<16x48xf32>, vector<48x128xf32>, vector<16x128xf32> -> vector<16x128xf32>
    %c0_25 = arith.constant 0 : index
    %c0_26 = arith.constant 0 : index
    %45 = vector.load %arg6[%c0_25, %c0_26] : memref<8x128xf32, #tpu.memory_space<vmem>>, vector<1x128xf32>
    %46 = vector.broadcast %45 : vector<1x128xf32> to vector<16x128xf32>
    %47 = arith.addf %44, %46 : vector<16x128xf32>
    %cst_27 = arith.constant dense<0.000000e+00> : vector<128xf32>
    %48 = vector.multi_reduction <add>, %47, %cst_27 [0] : vector<16x128xf32> to vector<128xf32>
    %49 = vector.shape_cast %48 : vector<128xf32> to vector<1x128xf32>
    %cst_28 = arith.constant 1.600000e+01 : f32
    %50 = vector.broadcast %cst_28 : f32 to vector<1x128xf32>
    %51 = arith.divf %49, %50 : vector<1x128xf32>
    %52 = vector.broadcast %51 : vector<1x128xf32> to vector<16x128xf32>
    %53 = arith.subf %47, %52 : vector<16x128xf32>
    %54 = arith.mulf %53, %53 : vector<16x128xf32>
    %cst_29 = arith.constant dense<0.000000e+00> : vector<128xf32>
    %55 = vector.multi_reduction <add>, %54, %cst_29 [0] : vector<16x128xf32> to vector<128xf32>
    %56 = vector.shape_cast %55 : vector<128xf32> to vector<1x128xf32>
    %cst_30 = arith.constant 1.600000e+01 : f32
    %57 = vector.broadcast %cst_30 : f32 to vector<1x128xf32>
    %58 = arith.divf %56, %57 : vector<1x128xf32>
    %cst_31 = arith.constant 9.99999974E-6 : f32
    %59 = vector.broadcast %cst_31 : f32 to vector<1x128xf32>
    %60 = arith.addf %58, %59 : vector<1x128xf32>
    %61 = math.rsqrt %60 : vector<1x128xf32>
    %c1_32 = arith.constant 1 : index
    %c0_33 = arith.constant 0 : index
    %62 = vector.load %arg6[%c1_32, %c0_33] : memref<8x128xf32, #tpu.memory_space<vmem>>, vector<1x128xf32>
    %63 = arith.mulf %62, %61 : vector<1x128xf32>
    %c2_34 = arith.constant 2 : index
    %c0_35 = arith.constant 0 : index
    %64 = vector.load %arg6[%c2_34, %c0_35] : memref<8x128xf32, #tpu.memory_space<vmem>>, vector<1x128xf32>
    %65 = arith.mulf %51, %63 : vector<1x128xf32>
    %66 = arith.subf %64, %65 : vector<1x128xf32>
    %67 = vector.broadcast %63 : vector<1x128xf32> to vector<16x128xf32>
    %68 = arith.mulf %47, %67 : vector<16x128xf32>
    %69 = vector.broadcast %66 : vector<1x128xf32> to vector<16x128xf32>
    %70 = arith.addf %68, %69 : vector<16x128xf32>
    %cst_36 = arith.constant 0.000000e+00 : f32
    %71 = vector.broadcast %cst_36 : f32 to vector<16x128xf32>
    %72 = arith.maximumf %70, %71 : vector<16x128xf32>
    %c0_37 = arith.constant 0 : index
    %c0_38 = arith.constant 0 : index
    %73 = vector.load %arg7[%c0_37, %c0_38] : memref<128x128xf32, #tpu.memory_space<vmem>>, vector<128x128xf32>
    %cst_39 = arith.constant dense<0.000000e+00> : vector<16x128xf32>
    %74 = tpu.matmul %72, %73, %cst_39 {dimension_numbers = #tpu.dot_dimension_numbers<[1], [0], [0], [1], [0, 0, 1, 1], [], []>} : vector<16x128xf32>, vector<128x128xf32>, vector<16x128xf32> -> vector<16x128xf32>
    %75 = arith.mulf %74, %74 : vector<16x128xf32>
    %cst_40 = arith.constant dense<0.000000e+00> : vector<16xf32>
    %76 = vector.multi_reduction <add>, %75, %cst_40 [1] : vector<16x128xf32> to vector<16xf32>
    %77 = vector.shape_cast %76 : vector<16xf32> to vector<16x1xf32>
    %cst_41 = arith.constant 1.000000e-24 : f32
    %78 = vector.broadcast %cst_41 : f32 to vector<16x1xf32>
    %79 = arith.maximumf %77, %78 : vector<16x1xf32>
    %80 = math.rsqrt %79 : vector<16x1xf32>
    %81 = vector.broadcast %80 : vector<16x1xf32> to vector<16x128xf32>
    %82 = arith.mulf %74, %81 : vector<16x128xf32>
    %c0_42 = arith.constant 0 : index
    %c0_43 = arith.constant 0 : index
    %83 = vector.load %arg9[%c0_42, %c0_43] : memref<16x128xf32, #tpu.memory_space<vmem>>, vector<16x128xf32>
    tpu.vector_store %arg9[%c0_42, %c0_43], %82 {strides = array<i32>} : memref<16x128xf32, #tpu.memory_space<vmem>>, vector<16x128xf32>,
    return
  }
}

</mosaic_0001>

<bundles_post_ra>
// kernel: _clip_forward.1
= control target key start
LH: loop header
LB: loop body
LE: loop exit
PB: predicated region body
PF: predicated region fallthrough
CT: control target
= control target key end

     0   :  { %15 = vsyncpa [#allocation3], 0  ;;  %s1151_s0 = inlined_call_operand.hbm [shape: f32[16,32], index: 0, kind: input, shape index: {}]   ;;  %s1152_s1 = inlined_call_operand.hbm [shape: f32[32,128], index: 1, kind: input, shape index: {}]   ;;  %s1153_s2 = inlined_call_operand.hbm [shape: f32[8,128], index: 2, kind: input, shape index: {}]   ;;  %s1154_s3 = inlined_call_operand.hbm [shape: f32[128,128], index: 3, kind: input, shape index: {}]   ;;  %s1155_s4 = inlined_call_operand.hbm [shape: f32[16,48], index: 4, kind: input, shape index: {}]   ;;  %s1156_s5 = inlined_call_operand.hbm [shape: f32[48,128], index: 5, kind: input, shape index: {}]   ;;  %s1157_s6 = inlined_call_operand.vmem [shape: f32[8,128], index: 6, kind: input, shape index: {}]   ;;  %s1158_s7 = inlined_call_operand.hbm [shape: f32[128,128], index: 7, kind: input, shape index: {}]   ;;  %s1159_s8 = inlined_call_operand.hbm [shape: f32[16,128], index: 8, kind: output, shape index: {0}]   ;;  %s1160_s9 = inlined_call_operand.hbm [shape: f32[16,128], index: 9, kind: output, shape index: {1}]  }
   0x1   :  { %16 = vsyncpa [#allocation6], 0 }
   0x2   :  { %17 = vsyncpa [#allocation9], 0 }
   0x3   :  { %18 = vsyncpa [#allocation12], 0 }
   0x4   :  { %19 = vsyncpa [#allocation4], 0 }
   0x5   :  { %20 = vsyncpa [#allocation16], 0  ;;  %s1010_s30 = smov [#allocation5]   ;;  %s1011_s11 = smov [#allocation8]  }
   0x6   :  { %s38_s10 = sshll.u32 %s1010_s30, 4  ;;  %s60_s12 = sshll.u32 %s1011_s11, 4  ;;  %s39_s10 = int_to_ptr.vmem [resolvable:$true] %s38_s10  ;;  %s61_s12 = int_to_ptr.vmem [resolvable:$true] %s60_s12 }
   0x7   :  { %s826_s13 = scalar_lea.vmem %s39_s10, 512  ;;  %p831_p1 = scmp.lt.s32.totalorder %s39_s10, %s39_s10 }
   0x8   :  { %p827_p0 = scmp.ne.s32.totalorder %s39_s10, %s826_s13  ;;  %p832_p2 = scmp.lt.s32.totalorder %s826_s13, %s826_s13 }
   0xa   :  { %p833_p3 = por %p832_p2, %p831_p1 }
   0xc   :  { %p834_p4 = pnand %p833_p3, %p827_p0 }
   0xe   :  { %837 = shalt.err (!%p834_p4)
}
   0xf   :  { %s1012_s14 = smov 128   ;;  %s1013_s15 = smov 8  }
  0x10   :  { %44 = dma.hbm_to_vmem [thread:$0]  %s1152_s1, 512, %s39_s10, [#allocation6], %s1012_s14, %s1012_s14, %s1013_s15  }
  0x11   :  { %s846_s18 = scalar_lea.vmem %s61_s12, 2048  ;;  %p851_p6 = scmp.lt.s32.totalorder %s61_s12, %s61_s12 }
  0x12   :  { %p847_p5 = scmp.ne.s32.totalorder %s61_s12, %s846_s18  ;;  %p852_p7 = scmp.lt.s32.totalorder %s846_s18, %s846_s18 }
  0x14   :  { %p853_p8 = por %p852_p7, %p851_p6 }
  0x16   :  { %p854_p9 = pnand %p853_p8, %p847_p5 }
  0x18   :  { %857 = shalt.err (!%p854_p9)
}
  0x19   :  { %66 = dma.hbm_to_vmem [thread:$0]  %s1154_s3, 2048, %s61_s12, [#allocation9], %s1012_s14, %s1012_s14, %s1013_s15  }
  0x1a   :  { %s1014_s21 = smov [#allocation11]   ;;  %s1015_s23 = smov [#allocation2]  }
  0x1b   :  { %s84_s22 = sshll.u32 %s1014_s21, 4  ;;  %s26_s24 = sshll.u32 %s1015_s23, 4  ;;  %s85_s22 = int_to_ptr.vmem [resolvable:$true] %s84_s22  ;;  %s27_s24 = int_to_ptr.vmem [resolvable:$true] %s26_s24 }
  0x1c   :  { %s866_s1 = scalar_lea.vmem %s85_s22, 768  ;;  %p871_p11 = scmp.lt.s32.totalorder %s85_s22, %s85_s22 }
  0x1d   :  { %p867_p10 = scmp.ne.s32.totalorder %s85_s22, %s866_s1  ;;  %p872_p12 = scmp.lt.s32.totalorder %s866_s1, %s866_s1 }
  0x1f   :  { %p873_p13 = por %p872_p12, %p871_p11 }
  0x21   :  { %p874_p0 = pnand %p873_p13, %p867_p10 }
  0x23   :  { %877 = shalt.err (!%p874_p0)
}
  0x24   :  { %90 = dma.hbm_to_vmem [thread:$0]  %s1156_s5, 768, %s85_s22, [#allocation12], %s1012_s14, %s1012_s14, %s1013_s15  }
  0x25   :  { %s886_s3 = scalar_lea.vmem %s27_s24, 256  ;;  %p891_p2 = scmp.lt.s32.totalorder %s27_s24, %s27_s24 }
  0x26   :  { %p887_p1 = scmp.ne.s32.totalorder %s27_s24, %s886_s3  ;;  %p892_p3 = scmp.lt.s32.totalorder %s886_s3, %s886_s3 }
  0x28   :  { %p893_p4 = por %p892_p3, %p891_p2 }
  0x2a   :  { %p894_p5 = pnand %p893_p4, %p887_p1 }
  0x2c   :  { %897 = shalt.err (!%p894_p5)
}
  0x2d   :  { %32 = dma.hbm_to_vmem [thread:$0]  %s1151_s0, 256, %s27_s24, [#allocation3], %s1012_s14, %s1012_s14, %s1013_s15  }
  0x2e   :  { %s1016_s29 = smov [#allocation7]   ;;  %s1017_s10 = smov [#allocation10]  }
  0x2f   :  { %s51_s30 = sshll.u32 %s1016_s29, 4  ;;  %s72_s11 = sshll.u32 %s1017_s10, 4  ;;  %s52_s30 = int_to_ptr.vmem [resolvable:$true] %s51_s30  ;;  %s73_s11 = int_to_ptr.vmem [resolvable:$true] %s72_s11 }
  0x30   :  { %s906_s5 = scalar_lea.vmem %s52_s30, 128  ;;  %p911_p7 = scmp.lt.s32.totalorder %s52_s30, %s52_s30 }
  0x31   :  { %p907_p6 = scmp.ne.s32.totalorder %s52_s30, %s906_s5  ;;  %p912_p8 = scmp.lt.s32.totalorder %s906_s5, %s906_s5 }
  0x33   :  { %p913_p9 = por %p912_p8, %p911_p7 }
  0x35   :  { %p914_p10 = pnand %p913_p9, %p907_p6 }
  0x37   :  { %917 = shalt.err (!%p914_p10)
}
  0x38   :  { %54 = dma.hbm_to_vmem [thread:$0]  %s1153_s2, 128, %s52_s30, [#allocation6]  }
  0x39   :  { %s926_s16 = scalar_lea.vmem %s73_s11, 256  ;;  %p931_p12 = scmp.lt.s32.totalorder %s73_s11, %s73_s11 }
  0x3a   :  { %p927_p11 = scmp.ne.s32.totalorder %s73_s11, %s926_s16  ;;  %p932_p13 = scmp.lt.s32.totalorder %s926_s16, %s926_s16 }
  0x3c   :  { %p933_p0 = por %p932_p13, %p931_p12 }
  0x3e   :  { %p934_p1 = pnand %p933_p0, %p927_p11 }
  0x40   :  { %937 = shalt.err (!%p934_p1)
}
  0x41   :  { %78 = dma.hbm_to_vmem [thread:$0]  %s1155_s4, 256, %s73_s11, [#allocation9], %s1012_s14, %s1012_s14, %s1013_s15  }
  0x42   :  { %s1018_s18 = smov [#allocation13]  }
  0x43   :  { %s98_s19 = sshll.u32 %s1018_s18, 4  ;;  %s99_s19 = int_to_ptr.vmem [resolvable:$true] %s98_s19 }
  0x44   :  { %s946_s20 = scalar_lea.vmem %s99_s19, 2048  ;;  %p951_p3 = scmp.lt.s32.totalorder %s99_s19, %s99_s19 }
  0x45   :  { %p947_p2 = scmp.ne.s32.totalorder %s99_s19, %s946_s20  ;;  %p952_p4 = scmp.lt.s32.totalorder %s946_s20, %s946_s20 }
  0x47   :  { %p953_p5 = por %p952_p4, %p951_p3 }
  0x49   :  { %p954_p6 = pnand %p953_p5, %p947_p2 }
  0x4b   :  { %957 = shalt.err (!%p954_p6)
}
  0x4c   :  { %104 = dma.hbm_to_vmem [thread:$0]  %s1158_s7, 2048, %s99_s19, [#allocation12], %s1012_s14, %s1012_s14, %s1013_s15  }
  0x4d   :  { %998 = dma.done.wait [#allocation3], 256  }
  0x4e   :  { %999 = vsyncadd [#allocation3], 4294967040 }
  0x4f   :  { %1000 = dma.done.wait [#allocation6], 640  }
  0x50   :  { %1001 = vsyncadd [#allocation6], 4294966656 }
  0x51   :  { %1002 = dma.done.wait [#allocation9], 2304  }
  0x52   :  { %1003 = vsyncadd [#allocation9], 4294964992 }
  0x53   :  { %1004 = dma.done.wait [#allocation12], 2816  }
  0x54   :  { %1005 = vsyncadd [#allocation12], 4294964480  ;;  %v131_v0 = vld [vmem:[#allocation5 + $0x18] sm:$0xff]  ;;  %v373_v1 = vld [vmem:[#allocation11 + $0x28] sm:$0xff]  ;;  %vm137_vm0 = vcmask 261120   ;;  %vm379_vm1 = vcmask 392192  }
  0x55   :  { %v130_v2 = vld [vmem:[#allocation5 + $0x10] sm:$0xff]  ;;  %699 = vmatprep.subr.mxu1 %v131_v0  ;;  %745 = vmatprep.subr.mxu0 %v373_v1  ;;  %v372_v3 = vld [vmem:[#allocation11 + $0x20] sm:$0xff]  ;;  %v129_v4 = vld [vmem:[#allocation5 + $0x8] sm:$0xff]  ;;  %s1020_s26 = smov [#allocation15]  }
  0x56   :  { %700 = vmatpush3.msra.mxu1 %v131_v0  ;;  %746 = vmatpush3.msra.mxu0 %v373_v1  ;;  %v371_v5 = vld [vmem:[#allocation11 + $0x18] sm:$0xff]  ;;  %v128_v6 = vld [vmem:[#allocation5] sm:$0xff]  ;;  %v370_v7 = vld [vmem:[#allocation11 + $0x10] sm:$0xff]  ;;  %s624_s3 = sshll.u32 %s1020_s26, 4  ;;  %s625_s3 = int_to_ptr.vmem [resolvable:$true] %s624_s3 }
  0x57   :  { %701 = vmatprep.subr.mxu1 %v130_v2  ;;  %747 = vmatprep.subr.mxu0 %v372_v3  ;;  %v126_v8 = vld [vmem:[#allocation2] sm:$0xff]  ;;  %v127_v9 = vld [vmem:[#allocation2 + $0x8] sm:$0xff]  ;;  %v369_v10 = vld [vmem:[#allocation11 + $0x8] sm:$0xff] }
  0x58   :  { %702 = vmatpush3.msra.mxu1 %v130_v2  ;;  %748 = vmatpush3.msra.mxu0 %v372_v3  ;;  %v366_v11 = vld [vmem:[#allocation10] sm:$0xff]  ;;  %v368_v12 = vld [vmem:[#allocation11] sm:$0xff]  ;;  %v367_v13 = vld [vmem:[#allocation10 + $0x8] sm:$0xff] }
  0x59   :  { %703 = vmatprep.subr.mxu1 %v129_v4  ;;  %749 = vmatprep.subr.mxu0 %v371_v5  ;;  %v276_v14 = vld [vmem:[#allocation8 + $0x78] sm:$0xff]  ;;  %v275_v15 = vld [vmem:[#allocation8 + $0x70] sm:$0xff]  ;;  %v274_v16 = vld [vmem:[#allocation8 + $0x68] sm:$0xff] }
  0x5a   :  { %704 = vmatpush3.msra.mxu1 %v129_v4  ;;  %750 = vmatpush3.msra.mxu0 %v371_v5  ;;  %v517_v17 = vld [vmem:[#allocation13 + $0x78] sm:$0xff]  ;;  %v273_v18 = vld [vmem:[#allocation8 + $0x60] sm:$0xff]  ;;  %v516_v19 = vld [vmem:[#allocation13 + $0x70] sm:$0xff] }
  0x5b   :  { %705 = vmatprep.subr.mxu1 %v128_v6  ;;  %751 = vmatprep.subr.mxu0 %v370_v7  ;;  %v272_v20 = vld [vmem:[#allocation8 + $0x58] sm:$0xff]  ;;  %v515_v21 = vld [vmem:[#allocation13 + $0x68] sm:$0xff]  ;;  %v271_v22 = vld [vmem:[#allocation8 + $0x50] sm:$0xff] }
  0x5c   :  { %706 = vmatpush3.msra.mxu1 %v128_v6  ;;  %707 = vmatprep.mubr.msk.f32.mxu1 %vm137_vm0, %v126_v8  ;;  %v514_v23 = vld [vmem:[#allocation13 + $0x60] sm:$0xff]  ;;  %v270_v24 = vld [vmem:[#allocation8 + $0x48] sm:$0xff]  ;;  %v513_v25 = vld [vmem:[#allocation13 + $0x58] sm:$0xff] }
  0x5d   :  { %752 = vmatpush3.msra.mxu0 %v370_v7  ;;  %708 = vmatmul.mubr.msk.f32.vlgmr.msra.gmra.mxu1 %vm137_vm0, %v127_v9  ;;  %v269_v26 = vld [vmem:[#allocation8 + $0x40] sm:$0xff]  ;;  %v512_v27 = vld [vmem:[#allocation13 + $0x50] sm:$0xff]  ;;  %v268_v28 = vld [vmem:[#allocation8 + $0x38] sm:$0xff] }
  0x5e   :  { %753 = vmatprep.subr.mxu0 %v369_v10  ;;  %757 = vmatprep.mubr.msk.f32.mxu0 %vm379_vm1, %v366_v11  ;;  %v511_v29 = vld [vmem:[#allocation13 + $0x48] sm:$0xff]  ;;  %v267_v30 = vld [vmem:[#allocation8 + $0x30] sm:$0xff]  ;;  %v510_v31 = vld [vmem:[#allocation13 + $0x40] sm:$0xff] }
  0x5f   :  { %754 = vmatpush3.msra.mxu0 %v369_v10  ;;  %710 = vmatprep.subr.mxu1 %v276_v14  ;;  %v266_v32 = vld [vmem:[#allocation8 + $0x28] sm:$0xff]  ;;  %v509_v33 = vld [vmem:[#allocation13 + $0x38] sm:$0xff]  ;;  %v265_v34 = vld [vmem:[#allocation8 + $0x20] sm:$0xff] }
  0x60   :  { %755 = vmatprep.subr.mxu0 %v368_v12  ;;  %711 = vmatpush3.msra.mxu1 %v276_v14  ;;  %v508_v35 = vld [vmem:[#allocation13 + $0x30] sm:$0xff]  ;;  %v264_v36 = vld [vmem:[#allocation8 + $0x18] sm:$0xff]  ;;  %v507_v37 = vld [vmem:[#allocation13 + $0x28] sm:$0xff] }
  0x61   :  { %756 = vmatpush3.msra.mxu0 %v368_v12  ;;  %712 = vmatprep.subr.mxu1 %v275_v15  ;;  %v263_v38 = vld [vmem:[#allocation8 + $0x10] sm:$0xff]  ;;  %v506_v39 = vld [vmem:[#allocation13 + $0x20] sm:$0xff]  ;;  %v262_v40 = vld [vmem:[#allocation8 + $0x8] sm:$0xff] }
  0x62   :  { %758 = vmatmul.mubr.msk.f32.vlgmr.msra.gmra.mxu0 %vm379_vm1, %v367_v13  ;;  %713 = vmatpush3.msra.mxu1 %v275_v15  ;;  %v505_v41 = vld [vmem:[#allocation13 + $0x18] sm:$0xff]  ;;  %v261_v42 = vld [vmem:[#allocation8] sm:$0xff]  ;;  %v504_v43 = vld [vmem:[#allocation13 + $0x10] sm:$0xff] }
  0x63   :  { %714 = vmatprep.subr.mxu1 %v274_v16  ;;  %760 = vmatprep.subr.mxu0 %v517_v17  ;;  %v503_v44 = vld [vmem:[#allocation13 + $0x8] sm:$0xff]  ;;  %v502_v45 = vld [vmem:[#allocation13] sm:$0xff]  ;;  %v643_v46 = vld [vmem:[#allocation7] ss:$0 sm:$0xff] }
  0x64   :  { %715 = vmatpush3.msra.mxu1 %v274_v16  ;;  %761 = vmatpush3.msra.mxu0 %v517_v17  ;;  %v646_v53 = vld [vmem:[%s1157_s6] ss:$0 sm:$0xff] }
  0x65   :  { %716 = vmatprep.subr.mxu1 %v273_v18  ;;  %762 = vmatprep.subr.mxu0 %v516_v19 }
  0x66   :  { %717 = vmatpush3.msra.mxu1 %v273_v18  ;;  %763 = vmatpush3.msra.mxu0 %v516_v19 }
  0x67   :  { %718 = vmatprep.subr.mxu1 %v272_v20  ;;  %764 = vmatprep.subr.mxu0 %v515_v21 }
  0x68   :  { %719 = vmatpush3.msra.mxu1 %v272_v20  ;;  %765 = vmatpush3.msra.mxu0 %v515_v21 }
  0x69   :  { %720 = vmatprep.subr.mxu1 %v271_v22  ;;  %766 = vmatprep.subr.mxu0 %v514_v23 }
  0x6a   :  { %721 = vmatpush3.msra.mxu1 %v271_v22  ;;  %767 = vmatpush3.msra.mxu0 %v514_v23 }
  0x6b   :  { %722 = vmatprep.subr.mxu1 %v270_v24  ;;  %768 = vmatprep.subr.mxu0 %v513_v25 }
  0x6c   :  { %723 = vmatpush3.msra.mxu1 %v270_v24  ;;  %769 = vmatpush3.msra.mxu0 %v513_v25 }
  0x6d   :  { %724 = vmatprep.subr.mxu1 %v269_v26  ;;  %770 = vmatprep.subr.mxu0 %v512_v27 }
  0x6e   :  { %725 = vmatpush3.msra.mxu1 %v269_v26  ;;  %771 = vmatpush3.msra.mxu0 %v512_v27 }
  0x6f   :  { %726 = vmatprep.subr.mxu1 %v268_v28  ;;  %772 = vmatprep.subr.mxu0 %v511_v29 }
  0x70   :  { %727 = vmatpush3.msra.mxu1 %v268_v28  ;;  %773 = vmatpush3.msra.mxu0 %v511_v29 }
  0x71   :  { %728 = vmatprep.subr.mxu1 %v267_v30  ;;  %774 = vmatprep.subr.mxu0 %v510_v31 }
  0x72   :  { %729 = vmatpush3.msra.mxu1 %v267_v30  ;;  %775 = vmatpush3.msra.mxu0 %v510_v31 }
  0x73   :  { %730 = vmatprep.subr.mxu1 %v266_v32  ;;  %776 = vmatprep.subr.mxu0 %v509_v33 }
  0x74   :  { %731 = vmatpush3.msra.mxu1 %v266_v32  ;;  %777 = vmatpush3.msra.mxu0 %v509_v33 }
  0x75   :  { %732 = vmatprep.subr.mxu1 %v265_v34  ;;  %778 = vmatprep.subr.mxu0 %v508_v35 }
  0x76   :  { %733 = vmatpush3.msra.mxu1 %v265_v34  ;;  %779 = vmatpush3.msra.mxu0 %v508_v35  ;;  %v247_v34 = vlaneseq }
  0x77   :  { %734 = vmatprep.subr.mxu1 %v264_v36  ;;  %780 = vmatprep.subr.mxu0 %v507_v37 }
  0x78   :  { %735 = vmatpush3.msra.mxu1 %v264_v36  ;;  %781 = vmatpush3.msra.mxu0 %v507_v37  ;;  %v248_v35 = vshrl.u32 %v247_v34, 7  ;;  %v242_v36 = vld [vmem:[#allocation7 + $0x1] sm:$0x1] }
  0x79   :  { %736 = vmatprep.subr.mxu1 %v263_v38  ;;  %782 = vmatprep.subr.mxu0 %v506_v39 }
  0x7a   :  { %737 = vmatpush3.msra.mxu1 %v263_v38  ;;  %783 = vmatpush3.msra.mxu0 %v506_v39  ;;  %v249_v37 = vsub.s32 0, %v248_v35 }
  0x7b   :  { %738 = vmatprep.subr.mxu1 %v262_v40  ;;  %784 = vmatprep.subr.mxu0 %v505_v41 }
  0x7c   :  { %739 = vmatpush3.msra.mxu1 %v262_v40  ;;  %785 = vmatpush3.msra.mxu0 %v505_v41  ;;  %v244_v40 = vld [vmem:[#allocation7 + $0x2] sm:$0x1] }
  0x7d   :  { %740 = vmatprep.subr.mxu1 %v261_v42  ;;  %786 = vmatprep.subr.mxu0 %v504_v43 }
  0x7e   :  { %741 = vmatpush3.msra.mxu1 %v261_v42  ;;  %787 = vmatpush3.msra.mxu0 %v504_v43  ;;  %v483_v42 = vld [vmem:[%s1157_s6 + $0x1] sm:$0x1] }
  0x7f   :  { %788 = vmatprep.subr.mxu0 %v503_v44 }
  0x80   :  { %789 = vmatpush3.msra.mxu0 %v503_v44 }
  0x81   :  { %790 = vmatprep.subr.mxu0 %v502_v45 }
  0x82   :  { %791 = vmatpush3.msra.mxu0 %v502_v45 }
 0x11d   :  { %v709_v47 = vpop.f32.mrf.mxu1 }
 0x11e   :  { %v1110_v48 = vadd.f32 %v709_v47, %v643_v46 }
 0x11f   :  { %v210_v49 = vpop.f32.mrf.mxu1 }
 0x120   :  { %v1112_v50 = vadd.f32 %v643_v46, %v210_v49 }
 0x122   :  { %v219_v51 = vadd.f32 %v1110_v48, %v1112_v50  ;;  %v759_v52 = vpop.f32.mrf.mxu0 }
 0x123   :  { %v1119_v56 = vadd.f32 %v759_v52, %v646_v53  ;;  %v485_v52 = vld [vmem:[%s1157_s6 + $0x2] sm:$0x1]  ;;  %s1019_s6 = smov [#allocation14]  }
 0x124   :  { %v220_v54 = vrot.slane %v219_v51, 4  ;;  %v452_v55 = vpop.f32.mrf.mxu0  ;;  %s612_s25 = sshll.u32 %s1019_s6, 4  ;;  %s613_s25 = int_to_ptr.vmem [resolvable:$true] %s612_s25 }
 0x125   :  { %v1121_v57 = vadd.f32 %v646_v53, %v452_v55  ;;  %s958_s27 = scalar_lea.vmem %s613_s25, 256  ;;  %p963_p8 = scmp.lt.s32.totalorder %s613_s25, %s613_s25 }
 0x126   :  { %v221_v58 = vadd.f32 %v220_v54, %v219_v51  ;;  %p959_p7 = scmp.ne.s32.totalorder %s613_s25, %s958_s27  ;;  %p964_p9 = scmp.lt.s32.totalorder %s958_s27, %s958_s27 }
 0x127   :  { %v461_v59 = vadd.f32 %v1119_v56, %v1121_v57 }
 0x128   :  { %v222_v60 = vrot.slane %v221_v58, 2  ;;  %p965_p10 = por %p964_p9, %p963_p8 }
 0x129   :  { %v462_v61 = vrot.slane %v461_v59, 4 }
 0x12a   :  { %v223_v62 = vadd.f32 %v222_v60, %v221_v58  ;;  %p966_p11 = pnand %p965_p10, %p959_p7 }
 0x12b   :  { %v463_v63 = vadd.f32 %v462_v61, %v461_v59 }
 0x12c   :  { %v224_v0 = vrot.slane %v223_v62, 1 }
 0x12d   :  { %v464_v1 = vrot.slane %v463_v63, 2 }
 0x12e   :  { %v225_v2 = vadd.f32 %v224_v0, %v223_v62 }
 0x12f   :  { %v465_v3 = vadd.f32 %v464_v1, %v463_v63 }
 0x130   :  { %v227_v4 = vmul.f32 0.0625, %v225_v2 }
 0x131   :  { %v466_v5 = vrot.slane %v465_v3, 1 }
 0x132   :  { %v228_v6 = vsub.f32 %v1112_v50, %v227_v4  ;;  %v229_v7 = vsub.f32 %v1110_v48, %v227_v4 }
 0x133   :  { %v467_v8 = vadd.f32 %v466_v5, %v465_v3 }
 0x134   :  { %v230_v9 = vmul.f32 %v228_v6, %v228_v6  ;;  %v231_v10 = vmul.f32 %v229_v7, %v229_v7 }
 0x135   :  { %v468_v11 = vmul.f32 0.0625, %v467_v8 }
 0x136   :  { %v232_v12 = vadd.f32 %v231_v10, %v230_v9 }
 0x137   :  { %v469_v13 = vsub.f32 %v1121_v57, %v468_v11  ;;  %v470_v14 = vsub.f32 %v1119_v56, %v468_v11 }
 0x138   :  { %v233_v15 = vrot.slane %v232_v12, 4 }
 0x139   :  { %v471_v16 = vmul.f32 %v469_v13, %v469_v13  ;;  %v472_v17 = vmul.f32 %v470_v14, %v470_v14 }
 0x13a   :  { %v234_v18 = vadd.f32 %v233_v15, %v232_v12 }
 0x13b   :  { %v473_v19 = vadd.f32 %v472_v17, %v471_v16 }
 0x13c   :  { %v235_v20 = vrot.slane %v234_v18, 2 }
 0x13d   :  { %v474_v21 = vrot.slane %v473_v19, 4 }
 0x13e   :  { %v236_v22 = vadd.f32 %v235_v20, %v234_v18 }
 0x13f   :  { %v475_v23 = vadd.f32 %v474_v21, %v473_v19 }
 0x140   :  { %v237_v24 = vrot.slane %v236_v22, 1 }
 0x141   :  { %v476_v25 = vrot.slane %v475_v23, 2 }
 0x142   :  { %v238_v26 = vadd.f32 %v237_v24, %v236_v22 }
 0x143   :  { %v477_v27 = vadd.f32 %v476_v25, %v475_v23 }
 0x144   :  { %v239_v28 = vmul.f32 0.0625, %v238_v26 }
 0x145   :  { %v478_v29 = vrot.slane %v477_v27, 1 }
 0x146   :  { %v240_v30 = vadd.f32 1e-05, %v239_v28 }
 0x147   :  { %v479_v31 = vadd.f32 %v478_v29, %v477_v27 }
 0x148   :  { %806 = vrsqrt.f32 %v240_v30 }
 0x149   :  { %v480_v32 = vmul.f32 0.0625, %v479_v31 }
 0x14b   :  { %v481_v33 = vadd.f32 1e-05, %v480_v32 }
 0x14d   :  { %808 = vrsqrt.f32 %v481_v33 }
 0x155   :  { %v807_v38 = vpop.eup %806 }
 0x156   :  { %v243_v39 = vmul.f32 %v807_v38, %v242_v36 }
 0x158   :  { %v250_v41 = vrot.slane %v243_v39, %v249_v37  ;;  %v245_v43 = vmul.f32 %v243_v39, %v227_v4 }
 0x15a   :  { %v809_v44 = vpop.eup %808  ;;  %v246_v45 = vsub.f32 %v244_v40, %v245_v43  ;;  %v251_v47 = vmul.f32 %v250_v41, %v1112_v50  ;;  %v252_v49 = vmul.f32 %v250_v41, %v1110_v48 }
 0x15b   :  { %v484_v46 = vmul.f32 %v809_v44, %v483_v42 }
 0x15c   :  { %v256_v51 = vrot.slane %v246_v45, %v249_v37 }
 0x15d   :  { %v491_v53 = vrot.slane %v484_v46, %v249_v37  ;;  %v486_v54 = vmul.f32 %v484_v46, %v468_v11 }
 0x15e   :  { %v257_v55 = vadd.f32 %v256_v51, %v251_v47  ;;  %v258_v58 = vadd.f32 %v256_v51, %v252_v49 }
 0x15f   :  { %v487_v59 = vsub.f32 %v485_v52, %v486_v54  ;;  %v492_v62 = vmul.f32 %v491_v53, %v1121_v57  ;;  %v493_v63 = vmul.f32 %v491_v53, %v1119_v56 }
 0x160   :  { %v259_v60 = vmax.f32 %v257_v55, 0.0  ;;  %v260_v61 = vmax.f32 %v258_v58, 0.0 }
 0x161   :  { %v497_v0 = vrot.slane %v487_v59, %v249_v37 }
 0x162   :  { %742 = vmatprep.mubr.f32.mxu1 %v259_v60 }
 0x163   :  { %743 = vmatmul.mubr.f32.vlgmr.msra.gmra.mxu1 %v260_v61  ;;  %v498_v48 = vadd.f32 %v497_v0, %v492_v62  ;;  %v499_v50 = vadd.f32 %v497_v0, %v493_v63 }
 0x165   :  { %v500_v1 = vmax.f32 %v498_v48, 0.0  ;;  %v501_v2 = vmax.f32 %v499_v50, 0.0 }
 0x167   :  { %792 = vmatprep.mubr.f32.mxu0 %v500_v1 }
 0x168   :  { %793 = vmatmul.mubr.f32.vlgmr.msra.gmra.mxu0 %v501_v2 }
 0x223   :  { %v744_v3 = vpop.f32.mrf.mxu1 }
 0x224   :  { %v353_v8 = vmul.f32 %v744_v3, %v744_v3 }
 0x225   :  { %v343_v4 = vpop.f32.mrf.mxu1 }
 0x226   :  { %v352_v5 = vmul.f32 %v343_v4, %v343_v4 }
 0x228   :  { %v794_v6 = vpop.f32.mrf.mxu0  ;;  %354 = vadd.xlane.f32.xlu0 %v352_v5 }
 0x229   :  { %v594_v56 = vmul.f32 %v794_v6, %v794_v6 }
 0x22a   :  { %v584_v7 = vpop.f32.mrf.mxu0 }
 0x22b   :  { %v593_v9 = vmul.f32 %v584_v7, %v584_v7 }
 0x22c   :  { %356 = vadd.xlane.f32.xlu0 %v353_v8 }
 0x22d   :  { %595 = vadd.xlane.f32.xlu1 %v593_v9 }
 0x231   :  { %597 = vadd.xlane.f32.xlu1 %v594_v56 }
 0x2b1   :  { %v355_v57 = vpop.xlane.xlu0 %354 }
 0x2b2   :  { %v358_v10 = vmax.f32 %v355_v57, 1e-24 }
 0x2b4   :  { %810 = vrsqrt.f32 %v358_v10 }
 0x2b5   :  { %v357_v11 = vpop.xlane.xlu0 %356 }
 0x2b6   :  { %v596_v12 = vpop.xlane.xlu1 %595  ;;  %v359_v13 = vmax.f32 %v357_v11, 1e-24 }
 0x2b7   :  { %v599_v14 = vmax.f32 %v596_v12, 1e-24 }
 0x2b8   :  { %812 = vrsqrt.f32 %v359_v13 }
 0x2b9   :  { %814 = vrsqrt.f32 %v599_v14 }
 0x2ba   :  { %v598_v15 = vpop.xlane.xlu1 %597 }
 0x2bb   :  { %v600_v16 = vmax.f32 %v598_v15, 1e-24 }
 0x2bd   :  { %816 = vrsqrt.f32 %v600_v16 }
 0x2c1   :  { %v811_v17 = vpop.eup %810 }
 0x2c2   :  { %v362_v18 = vmul.f32 %v811_v17, %v343_v4 }
 0x2c4   :  { %364 = vst [vmem:[#allocation14] sm:$0xff] %v362_v18 }
 0x2c5   :  { %v813_v19 = vpop.eup %812 }
 0x2c6   :  { %v815_v20 = vpop.eup %814  ;;  %v363_v21 = vmul.f32 %v813_v19, %v744_v3 }
 0x2c7   :  { %v603_v22 = vmul.f32 %v815_v20, %v584_v7 }
 0x2c8   :  { %365 = vst [vmem:[#allocation14 + $0x8] sm:$0xff] %v363_v21 }
 0x2c9   :  { %969 = shalt.err (!%p966_p11)
}
 0x2ca   :  { %618 = dma.vmem_to_hbm [thread:$0]  %s613_s25, 256, %s1159_s8, [#allocation4], %s1012_s14, %s1012_s14, %s1013_s15   ;;  %605 = vst [vmem:[#allocation15] sm:$0xff] %v603_v22  ;;  %v817_v23 = vpop.eup %816 }
 0x2cb   :  { %v604_v24 = vmul.f32 %v817_v23, %v794_v6  ;;  %s978_s30 = scalar_lea.vmem %s625_s3, 256  ;;  %p983_p13 = scmp.lt.s32.totalorder %s625_s3, %s625_s3 }
 0x2cc   :  { %p979_p12 = scmp.ne.s32.totalorder %s625_s3, %s978_s30  ;;  %p984_p0 = scmp.lt.s32.totalorder %s978_s30, %s978_s30 }
 0x2cd   :  { %606 = vst [vmem:[#allocation15 + $0x8] sm:$0xff] %v604_v24 }
 0x2ce   :  { %p985_p1 = por %p984_p0, %p983_p13 }
 0x2d0   :  { %p986_p2 = pnand %p985_p1, %p979_p12 }
 0x2d2   :  { %989 = shalt.err (!%p986_p2)
}
 0x2d3   :  { %630 = dma.vmem_to_hbm [thread:$0]  %s625_s3, 256, %s1160_s9, [#allocation16], %s1012_s14, %s1012_s14, %s1013_s15  }
 0x2d4   :  { %1006 = dma.done.wait [#allocation4], 256  }
 0x2d5   :  { %1007 = vsyncadd [#allocation4], 4294967040 }
 0x2d6   :  { %1008 = dma.done.wait [#allocation16], 256  }
 0x2d7   :  { %1009 = vsyncadd [#allocation16], 4294967040 }
 0x2d8   :  { %637 = vsyncpa [#allocation3], 1 }
 0x2d9   :  { %638 = vsyncpa [#allocation6], 1 }
 0x2da   :  { %639 = vsyncpa [#allocation9], 1 }
 0x2db   :  { %640 = vsyncpa [#allocation12], 1 }
 0x2dc   :  { %641 = vsyncpa [#allocation4], 1 }
 0x2dd   :  { %642 = vsyncpa [#allocation16], 1 }

</bundles_post_ra>
